<compile_context>
chip_gen: v6e
topology: v6e:2x2x1
jax: 0.10.0
libtpu: 0.0.40
codegen_flags: <defaults>
</compile_context>

<pallas_src>
import functools

import jax
import jax.numpy as jnp
from jax.experimental import pallas as pl
from jax.experimental.pallas import tpu as pltpu


def _round_up(a, m):
    return (a + m - 1) // m * m


def _cdiv(a, b):
    return -(-a // b)


def _apn_kernel(x_ref, s_ref, wg_ref, wb_ref, bg_ref, bb_ref, o_ref, *, eps, tc):
    # x_ref : (TC, N)      input features for one (batch, channel-tile)
    # s_ref : (S,  N)      style features for one batch element (resident across c-tiles)
    # wg_ref: (C_pad, S)   gamma half of the 1x1-conv weight (fully resident)
    # wb_ref: (C_pad, S)   beta  half of the 1x1-conv weight (fully resident)
    # bg_ref: (C_pad, 1)   gamma half of the 1x1-conv bias   (fully resident)
    # bb_ref: (C_pad, 1)   beta  half of the 1x1-conv bias   (fully resident)
    # o_ref : (TC, N)      output
    c_rows = wg_ref.shape[0]
    if tc == c_rows:
        # Single channel tile: no slicing needed (also covers TC == C with C % 8 != 0).
        wg, wb = wg_ref[...], wb_ref[...]
        bg, bb = bg_ref[...], bb_ref[...]
    else:
        # Multi-tile path: TC is a multiple of 8 by construction -> aligned slice.
        row0 = pl.multiple_of(pl.program_id(1) * tc, 8)
        wg = wg_ref[pl.ds(row0, tc), :]
        wb = wb_ref[pl.ds(row0, tc), :]
        bg = bg_ref[pl.ds(row0, tc), :]
        bb = bb_ref[pl.ds(row0, tc), :]

    s = s_ref[...]
    # Pointwise Conv1d == per-batch matmul over the channel dim (MXU, f32 accumulate).
    gamma = jnp.dot(wg, s, preferred_element_type=jnp.float32) + bg.astype(jnp.float32)
    beta = jnp.dot(wb, s, preferred_element_type=jnp.float32) + bb.astype(jnp.float32)

    # InstanceNorm1d over the (un-padded) point axis, per (batch, channel):
    # two-pass centered variance in f32 (avoids E[x^2]-E[x]^2 cancellation), biased.
    xf = x_ref[...].astype(jnp.float32)
    inv_n = jnp.float32(1.0 / x_ref.shape[-1])
    mean = jnp.sum(xf, axis=-1, keepdims=True) * inv_n
    centered = xf - mean
    var = jnp.sum(centered * centered, axis=-1, keepdims=True) * inv_n
    norm = centered * jax.lax.rsqrt(var + eps)

    o_ref[...] = (gamma * norm + beta).astype(o_ref.dtype)


def _vmem_capacity_bytes():
    try:
        info = pltpu.get_tpu_info()
        for attr in ("vmem_capacity_bytes", "vmem_bytes", "vmem_size_bytes"):
            v = getattr(info, attr, None)
            if v:
                return int(v)
    except Exception:
        pass
    return 128 * 1024 * 1024


def _select_tc(C, est_fn, budget, min_tiles):
    """Pick a channel tile: either the full C, or a multiple of 8 minimizing padding."""
    single_tile_ok = est_fn(C) <= budget
    if C <= 8:
        return C
    if min_tiles <= 1 and single_tile_ok:
        return C
    best = None  # (pad, -tc, tc): minimize padding first, then prefer the largest tile
    for tc in range(8, min(C, 2048) + 1, 8):
        if est_fn(tc) > budget:
            continue
        n_tiles = _cdiv(C, tc)
        if n_tiles < min_tiles:
            continue
        pad = n_tiles * tc - C
        key = (pad, -tc)
        if best is None or key < best[:2]:
            best = (pad, -tc, tc)
    if best is None:
        return C if single_tile_ok else 8  # best effort
    # Don't pay a channel-padding HBM pass just to split work for the megacore.
    if best[0] > 0 and min_tiles > 1 and single_tile_ok:
        return C
    return best[2]


def adaptive_point_norm(x, style, weight, bias, *, eps=1e-5):
    """x: (B, C, N), style: (B, S, N), weight: (2C, S), bias: (2C,) or (2C, 1).

    Returns gamma * InstanceNorm1d(x) + beta with (gamma, beta) = Conv1d_1x1(style);
    same dtype / layout (NCL) as x.
    """
    B, C, N = x.shape
    S = style.shape[1]
    assert weight.shape == (2 * C, S), weight.shape
    bias = jnp.asarray(bias).reshape(2 * C, 1)

    x_item = jnp.dtype(x.dtype).itemsize
    s_item = jnp.dtype(style.dtype).itemsize
    w_item = jnp.dtype(weight.dtype).itemsize
    C8 = _round_up(C, 8)

    def est_fn(tc):
        xb = 2 * tc * N * x_item            # x block (double-buffered)
        ob = 2 * tc * N * x_item            # out block (double-buffered)
        sb = 2 * S * N * s_item             # style block (resident across c, 2 bufs)
        wb = 2 * 2 * C8 * S * w_item        # resident gamma/beta weights
        tmp = 4 * tc * N * 4                # f32 intermediates: xf, centered, gamma, beta
        return xb + ob + sb + wb + tmp

    phys = _vmem_capacity_bytes()
    if phys <= 72 * 1024 * 1024:            # v7x-class core (64 MiB VMEM)
        budget, limit_cap = 36 * 1024 * 1024, 52 * 1024 * 1024
    else:                                    # v5e / v6e (128 MiB VMEM)
        budget, limit_cap = 88 * 1024 * 1024, 100 * 1024 * 1024

    min_tiles = 2 if B == 1 else 1           # give a v7x megacore two shards at B == 1
    TC = _select_tc(C, est_fn, budget, min_tiles)
    n_c_tiles = _cdiv(C, TC)
    C_pad = n_c_tiles * TC
    pad_c = C_pad - C

    # Conditional padding: only along channels, only when a non-dividing tile is forced.
    # N is never padded (full-dim block, exact statistics, no extra HBM passes).
    x_in = jnp.pad(x, ((0, 0), (0, pad_c), (0, 0))) if pad_c else x
    w_g, w_b = weight[:C], weight[C:]
    b_g, b_b = bias[:C], bias[C:]
    if pad_c:
        w_g = jnp.pad(w_g, ((0, pad_c), (0, 0)))
        w_b = jnp.pad(w_b, ((0, pad_c), (0, 0)))
        b_g = jnp.pad(b_g, ((0, pad_c), (0, 0)))
        b_b = jnp.pad(b_b, ((0, pad_c), (0, 0)))

    est = est_fn(TC)
    vmem_limit = int(min(limit_cap, max(32 * 1024 * 1024, est + est // 2)))

    kernel = functools.partial(_apn_kernel, eps=float(eps), tc=TC)

    out = pl.pallas_call(
        kernel,
        out_shape=jax.ShapeDtypeStruct((B, C_pad, N), x.dtype),
        grid_spec=pltpu.PrefetchScalarGridSpec(
            num_scalar_prefetch=0,
            grid=(B, n_c_tiles),
            in_specs=[
                # batch dim squeezed via `None`; point axis is the full N (no pad).
                pl.BlockSpec((None, TC, N), lambda b, c: (b, c, 0)),
                # style block does not depend on c -> stays resident across c-tiles.
                pl.BlockSpec((None, S, N), lambda b, c: (b, 0, 0)),
                # weights / biases fully resident (constant index_map -> single DMA).
                pl.BlockSpec((C_pad, S), lambda b, c: (0, 0)),
                pl.BlockSpec((C_pad, S), lambda b, c: (0, 0)),
                pl.BlockSpec((C_pad, 1), lambda b, c: (0, 0)),
                pl.BlockSpec((C_pad, 1), lambda b, c: (0, 0)),
            ],
            out_specs=pl.BlockSpec((None, TC, N), lambda b, c: (b, c, 0)),
        ),
        compiler_params=pltpu.CompilerParams(
            dimension_semantics=("parallel", "parallel"),
            vmem_limit_bytes=vmem_limit,
        ),
    )(x_in, style, w_g, w_b, b_g, b_b)

    # Padded channel rows (if any) hold don't-care values; always slice them off.
    return out[:, :C, :] if pad_c else out


def _reference(x, style, weight, bias, eps=1e-5):
    # Pure-JAX reference mirroring the PyTorch module.
    style_out = jnp.einsum("os,bsn->bon", weight, style) + jnp.reshape(bias, (1, -1, 1))
    C = x.shape[1]
    gamma, beta = style_out[:, :C, :], style_out[:, C:, :]
    mean = jnp.mean(x, axis=-1, keepdims=True)
    var = jnp.mean((x - mean) ** 2, axis=-1, keepdims=True)
    return gamma * (x - mean) / jnp.sqrt(var + eps) + beta


if __name__ == "__main__":
    B, C, S, N = 2, 4, 8, 16  # batch, in_channel, style_dim, num_points

    key = jax.random.PRNGKey(0)
    k_x, k_s, k_w = jax.random.split(key, 3)

    x = jax.random.normal(k_x, (B, C, N), dtype=jnp.float32)
    style = jax.random.normal(k_s, (B, S, N), dtype=jnp.float32)

    # self.style = Conv1d(style_dim, 2*C, 1); weight ~ N(0,1); bias[:C]=1, bias[C:]=0
    weight = jax.random.normal(k_w, (2 * C, S), dtype=jnp.float32)
    bias = jnp.concatenate([jnp.ones((C,), jnp.float32), jnp.zeros((C,), jnp.float32)])

    out = adaptive_point_norm(x, style, weight, bias)
    out = jax.block_until_ready(out)

    ref = _reference(x, style, weight, bias)
    assert out.shape == (B, C, N)
    assert jnp.allclose(out, ref, atol=1e-4, rtol=1e-4), "mismatch vs reference"

    print("KERNEL_OK")
</pallas_src>

<mosaic_0001>
module attributes {stable_mosaic.version = 11 : i64} {
  func.func @_apn_kernel(%arg0: i32, %arg1: i32, %arg2: memref<1x4x16xf32, #tpu.memory_space<vmem>>, %arg3: memref<1x8x16xf32, #tpu.memory_space<vmem>>, %arg4: memref<4x8xf32, #tpu.memory_space<vmem>>, %arg5: memref<4x8xf32, #tpu.memory_space<vmem>>, %arg6: memref<4x1xf32, #tpu.memory_space<vmem>>, %arg7: memref<4x1xf32, #tpu.memory_space<vmem>>, %arg8: memref<1x4x16xf32, #tpu.memory_space<vmem>>) attributes {dimension_semantics = [#tpu.dimension_semantics<parallel>, #tpu.dimension_semantics<parallel>], iteration_bounds = array<i64: 2, 1>, scalar_prefetch = 0 : i64, scratch_operands = 0 : i64, tpu.core_type = #tpu.core_type<tc>, window_params = [{transform_indices = @transform_0, window_bounds = array<i64: 1, 4, 16>}, {transform_indices = @transform_1, window_bounds = array<i64: 1, 8, 16>}, {pipeline_mode = #tpu.pipeline_mode<synchronous>, transform_indices = @transform_2, window_bounds = array<i64: 4, 8>}, {pipeline_mode = #tpu.pipeline_mode<synchronous>, transform_indices = @transform_3, window_bounds = array<i64: 4, 8>}, {pipeline_mode = #tpu.pipeline_mode<synchronous>, transform_indices = @transform_4, window_bounds = array<i64: 4, 1>}, {pipeline_mode = #tpu.pipeline_mode<synchronous>, transform_indices = @transform_5, window_bounds = array<i64: 4, 1>}, {transform_indices = @transform_6, window_bounds = array<i64: 1, 4, 16>}]} {
    %c0 = arith.constant 0 : index
    %c0_0 = arith.constant 0 : index
    %0 = vector.load %arg4[%c0, %c0_0] : memref<4x8xf32, #tpu.memory_space<vmem>>, vector<4x8xf32>
    %c0_1 = arith.constant 0 : index
    %c0_2 = arith.constant 0 : index
    %1 = vector.load %arg5[%c0_1, %c0_2] : memref<4x8xf32, #tpu.memory_space<vmem>>, vector<4x8xf32>
    %c0_3 = arith.constant 0 : index
    %c0_4 = arith.constant 0 : index
    %2 = vector.load %arg6[%c0_3, %c0_4] : memref<4x1xf32, #tpu.memory_space<vmem>>, vector<4x1xf32>
    %c0_5 = arith.constant 0 : index
    %c0_6 = arith.constant 0 : index
    %3 = vector.load %arg7[%c0_5, %c0_6] : memref<4x1xf32, #tpu.memory_space<vmem>>, vector<4x1xf32>
    %c0_7 = arith.constant 0 : index
    %c0_8 = arith.constant 0 : index
    %c0_9 = arith.constant 0 : index
    %4 = vector.load %arg3[%c0_7, %c0_8, %c0_9] : memref<1x8x16xf32, #tpu.memory_space<vmem>>, vector<1x8x16xf32>
    %5 = vector.shape_cast %4 : vector<1x8x16xf32> to vector<8x16xf32>
    %cst = arith.constant dense<0.000000e+00> : vector<4x16xf32>
    %6 = tpu.matmul %0, %5, %cst {dimension_numbers = #tpu.dot_dimension_numbers<[1], [0], [0], [1], [0, 0, 1, 1], [], []>} : vector<4x8xf32>, vector<8x16xf32>, vector<4x16xf32> -> vector<4x16xf32>
    %7 = vector.broadcast %2 : vector<4x1xf32> to vector<4x16xf32>
    %8 = arith.addf %6, %7 : vector<4x16xf32>
    %cst_10 = arith.constant dense<0.000000e+00> : vector<4x16xf32>
    %9 = tpu.matmul %1, %5, %cst_10 {dimension_numbers = #tpu.dot_dimension_numbers<[1], [0], [0], [1], [0, 0, 1, 1], [], []>} : vector<4x8xf32>, vector<8x16xf32>, vector<4x16xf32> -> vector<4x16xf32>
    %10 = vector.broadcast %3 : vector<4x1xf32> to vector<4x16xf32>
    %11 = arith.addf %9, %10 : vector<4x16xf32>
    %c0_11 = arith.constant 0 : index
    %c0_12 = arith.constant 0 : index
    %c0_13 = arith.constant 0 : index
    %12 = vector.load %arg2[%c0_11, %c0_12, %c0_13] : memref<1x4x16xf32, #tpu.memory_space<vmem>>, vector<1x4x16xf32>
    %13 = vector.shape_cast %12 : vector<1x4x16xf32> to vector<4x16xf32>
    %cst_14 = arith.constant dense<0.000000e+00> : vector<4xf32>
    %14 = vector.multi_reduction <add>, %13, %cst_14 [1] : vector<4x16xf32> to vector<4xf32>
    %15 = vector.shape_cast %14 : vector<4xf32> to vector<4x1xf32>
    %cst_15 = arith.constant 6.250000e-02 : f32
    %16 = vector.broadcast %cst_15 : f32 to vector<4x1xf32>
    %17 = arith.mulf %15, %16 : vector<4x1xf32>
    %18 = vector.broadcast %17 : vector<4x1xf32> to vector<4x16xf32>
    %19 = arith.subf %13, %18 : vector<4x16xf32>
    %20 = arith.mulf %19, %19 : vector<4x16xf32>
    %cst_16 = arith.constant dense<0.000000e+00> : vector<4xf32>
    %21 = vector.multi_reduction <add>, %20, %cst_16 [1] : vector<4x16xf32> to vector<4xf32>
    %22 = vector.shape_cast %21 : vector<4xf32> to vector<4x1xf32>
    %cst_17 = arith.constant 6.250000e-02 : f32
    %23 = vector.broadcast %cst_17 : f32 to vector<4x1xf32>
    %24 = arith.mulf %22, %23 : vector<4x1xf32>
    %cst_18 = arith.constant 9.99999974E-6 : f32
    %25 = vector.broadcast %cst_18 : f32 to vector<4x1xf32>
    %26 = arith.addf %24, %25 : vector<4x1xf32>
    %27 = math.rsqrt %26 : vector<4x1xf32>
    %28 = vector.broadcast %27 : vector<4x1xf32> to vector<4x16xf32>
    %29 = arith.mulf %19, %28 : vector<4x16xf32>
    %30 = arith.mulf %8, %29 : vector<4x16xf32>
    %31 = arith.addf %30, %11 : vector<4x16xf32>
    %c0_19 = arith.constant 0 : index
    %c0_20 = arith.constant 0 : index
    %c0_21 = arith.constant 0 : index
    %32 = vector.load %arg8[%c0_19, %c0_20, %c0_21] : memref<1x4x16xf32, #tpu.memory_space<vmem>>, vector<1x4x16xf32>
    %33 = vector.shape_cast %32 : vector<1x4x16xf32> to vector<4x16xf32>
    %34 = vector.shape_cast %31 : vector<4x16xf32> to vector<1x4x16xf32>
    tpu.vector_store %arg8[%c0_19, %c0_20, %c0_21], %34 {strides = array<i32>} : memref<1x4x16xf32, #tpu.memory_space<vmem>>, vector<1x4x16xf32>,
    return
  }
  func.func @transform_0(%arg0: i32, %arg1: i32) -> (i32, i32, i32) {
    %c0_i32 = arith.constant 0 : i32
    %c0_i32_0 = arith.constant 0 : i32
    return %arg0, %arg1, %c0_i32 : i32, i32, i32
  }
  func.func @transform_1(%arg0: i32, %arg1: i32) -> (i32, i32, i32) {
    %c0_i32 = arith.constant 0 : i32
    %c0_i32_0 = arith.constant 0 : i32
    %c0_i32_1 = arith.constant 0 : i32
    return %arg0, %c0_i32, %c0_i32_0 : i32, i32, i32
  }
  func.func @transform_2(%arg0: i32, %arg1: i32) -> (i32, i32) {
    %c0_i32 = arith.constant 0 : i32
    %c0_i32_0 = arith.constant 0 : i32
    %c0_i32_1 = arith.constant 0 : i32
    return %c0_i32, %c0_i32_0 : i32, i32
  }
  func.func @transform_3(%arg0: i32, %arg1: i32) -> (i32, i32) {
    %c0_i32 = arith.constant 0 : i32
    %c0_i32_0 = arith.constant 0 : i32
    %c0_i32_1 = arith.constant 0 : i32
    return %c0_i32, %c0_i32_0 : i32, i32
  }
  func.func @transform_4(%arg0: i32, %arg1: i32) -> (i32, i32) {
    %c0_i32 = arith.constant 0 : i32
    %c0_i32_0 = arith.constant 0 : i32
    %c0_i32_1 = arith.constant 0 : i32
    return %c0_i32, %c0_i32_0 : i32, i32
  }
  func.func @transform_5(%arg0: i32, %arg1: i32) -> (i32, i32) {
    %c0_i32 = arith.constant 0 : i32
    %c0_i32_0 = arith.constant 0 : i32
    %c0_i32_1 = arith.constant 0 : i32
    return %c0_i32, %c0_i32_0 : i32, i32
  }
  func.func @transform_6(%arg0: i32, %arg1: i32) -> (i32, i32, i32) {
    %c0_i32 = arith.constant 0 : i32
    %c0_i32_0 = arith.constant 0 : i32
    return %arg0, %arg1, %c0_i32 : i32, i32, i32
  }
}

</mosaic_0001>

<bundles_post_ra>
// kernel: tpu_custom_call.1
= control target key start
LH: loop header
LB: loop body
LE: loop exit
PB: predicated region body
PF: predicated region fallthrough
CT: control target
= control target key end

     0   :  { %s1093_s0 = inlined_call_operand.vmem [shape: f32[2,4,16], index: 0, kind: input, shape index: {}]   ;;  %s1094_s1 = inlined_call_operand.hbm [shape: f32[2,8,16], index: 1, kind: input, shape index: {}]   ;;  %s1095_s2 = inlined_call_operand.vmem [shape: f32[4,8], index: 2, kind: input, shape index: {}]   ;;  %s1096_s3 = inlined_call_operand.hbm [shape: f32[4,8], index: 3, kind: input, shape index: {}]   ;;  %s1097_s4 = inlined_call_operand.vmem [shape: f32[4,1], index: 4, kind: input, shape index: {}]   ;;  %s1098_s5 = inlined_call_operand.vmem [shape: f32[4,1], index: 5, kind: input, shape index: {}]   ;;  %s1099_s6 = inlined_call_operand.hbm [shape: f32[2,4,16], index: 6, kind: output, shape index: {}]  }
   0x1   :  { %1102 = sst [smem:[#allocation12_spill]] %s1096_s3 }
   0x2   :  { %11 = vsyncpa [#allocation3], 0 }
   0x3   :  { %13 = vsyncpa [#allocation3 + $0x1], 0 }
   0x4   :  { %14 = vsyncpa [#allocation6], 0 }
   0x5   :  { %15 = vsyncpa [#allocation4], 0 }
   0x6   :  { %17 = vsyncpa [#allocation4 + $0x1], 0  ;;  %s914_s21 = smov 0   ;;  %s916_s22 = smov 0  }
   0x7   :  { %s918_s23 = smov 0   ;;  %s920_s24 = smov 0  }
   0x8   :  { %s922_s25 = smov 0   ;;  %s924_s26 = smov 0  }
   0x9 LB: > { %s621_s27 = sadd.s32 4294967295, %s871_s26   ;;  %s622_s28 = sadd.s32 4294967294, %s871_s26   ;;  %s871_s26 = sphi %s924_s26, %s23_s26   ;;  %s867_s25 = sphi %s922_s25, %s1121_s25   ;;  %s863_s24 = sphi %s920_s24, %s1120_s24   ;;  %s859_s23 = sphi %s918_s23, %s1119_s23   ;;  %s855_s22 = sphi %s916_s22, %s1118_s22   ;;  %s851_s21 = sphi %s914_s21, %s1117_s21  }
   0xa   : > { %p83_p0 = scmp.ne.s32.totalorder %s855_s22, %s851_s21  ;;  %p948_p1 = scmp.eq.s32.totalorder %s621_s27, 0 }
   0xb   : > { %p952_p2 = scmp.eq.s32.totalorder %s621_s27, 1  ;;  %p199_p3 = scmp.eq.s32.totalorder %s622_s28, 1 }
   0xc   : > { %p958_p4 = por %p948_p1, %p83_p0  ;;  %p623_p5 = scmp.ge.s32.totalorder %s871_s26, 1 }
   0xd   : > { %p963_p6 = por %p199_p3, %p83_p0  ;;  %p206_p7 = scmp.lt.s32.totalorder %s871_s26, 3 }
   0xe   : > { %s1105_s7 = scalar_select %p958_p4, 1, 0 }
   0xf   : > { %s1106_s8 = scalar_select %p963_p6, 1, 0 }
  0x10   : > { %p968_p8 = pnand %p623_p5, %p206_p7  ;;  %s873_s10 = smov [#allocation5]  }
  0x11   : > { %s222_s11 = sshll.u32 %s873_s10, 4  ;;  %s35_s13 = sadd.s32 1, %s867_s25  ;;  %s223_s11 = int_to_ptr.vmem [resolvable:$true] %s222_s11 }
  0x12   : > { %p661_p10 = pneg %p968_p8  ;;  %s70_s14 = sadd.s32 1, %s859_s23 }
  0x13   : > { %p37_p12 = scmp.ge.s32.totalorder %s35_s13, 2  ;;  %s744_s15 = scalar_lea.vmem %s223_s11, 64 }
  0x14   : > { %p977_p11 = pnand %p661_p10, %p948_p1  ;;  %p745_p0 = scmp.ne.s32.totalorder %s223_s11, %s744_s15 }
  0x15   : > { %p752_p7 = scmp.lt.s32.totalorder %s223_s11, %s223_s11  ;;  %p753_p6 = scmp.lt.s32.totalorder %s744_s15, %s744_s15 }
  0x16   : > { %p735_p13 = pneg %p977_p11 }
  0x17   : > { %p754_p9 = por %p753_p6, %p752_p7 }
  0x18   : > { %p747_p3 = pnand %p745_p0, %p735_p13 }
  0x1a   : > { %p748_p5 = pneg %p747_p3 }
  0x1c   : > { %p755_p4 = pnand %p754_p9, %p748_p5 }
  0x1e   : > { %758 = shalt.err (!%p755_p4)
}
  0x1f   : > { %s1109_s3 = sld [smem:[#allocation12_spill]]  ;;  %s1123_s13 = smov (%p37_p12, %s35_s13), 0 }
  0x20   : > { %1110 = sst [smem:[#allocation11_spill]] %s1123_s13  ;;  %p77_p6 = scmp.ne.s32.totalorder %s859_s23, %s855_s22 }
  0x21   : > { %p78_p4 = scmp.eq.s32.totalorder %s871_s26, 0  ;;  %s67_s18 = ssub.s32 %s867_s25, %s1123_s13 }
  0x22   : > { %p674_p9 = scmp.lt.s32.totalorder %s871_s26, 2  ;;  %p68_p10 = scmp.eq.s32.totalorder %s67_s18, 0 }
  0x23   : > { %p79_p13 = por %p78_p4, %p77_p6  ;;  %p1000_p0 = por %p952_p2, %p77_p6 }
  0x24   : > { %s249_s20 = sand.u32 1, %s859_s23   ;;  %s627_s10 = sshll.u32 %s867_s25, 7 }
  0x25   : > { %664 = dma.hbm_to_vmem [thread:$0]  (!%p977_p11), %s1109_s3, 64, %s223_s11, [#allocation6]  }
  0x26   : > { %s1006_s27 = scalar_select %p68_p10, %s859_s23, %s70_s14  }
  0x27   : > { %s626_s28 = sshll.u32 %s249_s20, 3  ;;  %s258_s15 = scalar_lea.hbm %s1094_s1, %s627_s10 }
  0x28   : > { %s253_s16 = scalar_lea.vmem [#allocation2], %s626_s28  ;;  %p1012_p11 = pnand %p674_p9, %p79_p13 }
  0x29   : > { %s260_s17 = sshll.u32 %s253_s16, 4  ;;  %s250_s30 = scalar_lea.sflag [#allocation3], %s249_s20  ;;  %s261_s17 = int_to_ptr.vmem [resolvable:$true] %s260_s17 }
  0x2a   : > { %p761_p2 = pneg %p1012_p11  ;;  %s772_s3 = scalar_lea.vmem %s261_s17, 128 }
  0x2b   : > { %p773_p12 = scmp.ne.s32.totalorder %s261_s17, %s772_s3  ;;  %s874_s14 = smov [#allocation2]  }
  0x2c   : > { %s777_s13 = sshll.u32 %s874_s14, 4  ;;  %s778_s13 = int_to_ptr.vmem [resolvable:$false] %s777_s13 }
  0x2d   : > { %p775_p3 = pnand %p773_p12, %p761_p2  ;;  %s779_s11 = scalar_lea.vmem %s778_s13, 256 }
  0x2e   : > { %p780_p7 = scmp.lt.s32.totalorder %s261_s17, %s778_s13  ;;  %p781_p6 = scmp.lt.s32.totalorder %s779_s11, %s772_s3 }
  0x2f   : > { %p776_p5 = pneg %p775_p3 }
  0x30   : > { %p782_p4 = por %p781_p6, %p780_p7 }
  0x32   : > { %p783_p10 = pnand %p782_p4, %p776_p5 }
  0x34   : > { %786 = shalt.err (!%p783_p10)
}
  0x35   : > { %668 = dma.hbm_to_vmem [thread:$0]  (!%p1012_p11), %s258_s15, 128, %s261_s17, %s250_s30  }
  0x36   : > { %269 = sbr.rel (%p968_p8) target bundleno = 390 (0x186), region = 44  ;;  %s1023_s20 = sand.u32 (!%p968_p8), 1, %s855_s22  }
  0x37   : > { %s629_s28 = sshll.u32 (!%p968_p8), %s1023_s20, 3  ;;  %s272_s10 = scalar_lea.sflag (!%p968_p8), [#allocation3], %s1023_s20 }
  0x38   : > { %s275_s12 = scalar_lea.vmem (!%p968_p8), [#allocation2], %s629_s28  ;;  %p1113_p9 = scmp.ne.s32.totalorder (!%p968_p8), %s1105_s7, 0 }
  0x3b   : > { %838 = dma.done.wait (%p1113_p9), %s272_s10, 128  }
  0x3c   : > { %840 = vsyncadd (%p1113_p9), %s272_s10, 4294967168 }
  0x3d   : > { %842 = dma.done.wait (%p948_p1), [#allocation6], 64  }
  0x3e   : > { %844 = vsyncadd (%p948_p1), [#allocation6], 4294967232  ;;  %p315_p8 = scmp.lt.s32.totalorder %s863_s24, 1  ;;  %v875_v0 = vmov 0.0   ;;  %vm876_vm0 = vmmov 0   ;;  %vm485_vm1 = vcmask 125952  }
  0x3f   : > { %643 = vmatprep.subr.mxu0 %v875_v0  ;;  %648 = vmatprep.subr.mxu1 %v875_v0  ;;  %vm332_vm2 = vcmask 64512   ;;  %v326_v2 = vld [vmem:[%s275_s12] sm:$0xff]  ;;  %v323_v5 = vld [vmem:[#allocation5] sm:$0xf]  ;;  %v877_v7 = vmov 0   ;;  %s631_s11 = sshll.u32 %s1023_s20, 2 }
  0x40   : > { %s316_s3 = scalar_select %p315_p8, %s863_s24, 1  ;;  %645 = vmatprep.mubr.msk.f32.mxu0 %vm876_vm0, %v875_v0  ;;  %650 = vmatprep.mubr.msk.f32.mxu1 %vm876_vm0, %v875_v0  ;;  %v322_v3 = vld [vmem:[%s1095_s2] sm:$0xf] }
  0x41   : > { %644 = vmatpush3.msra.mxu0 %v326_v2  ;;  %649 = vmatpush3.msra.mxu1 %v326_v2  ;;  %v324_v6 = vld [vmem:[%s1097_s4] sm:$0xf]  ;;  %s636_s28 = sshll.u32 %s863_s24, 6  ;;  %s314_s10 = scalar_lea.vmem [#allocation7], %s631_s11 }
  0x42   : > { %s632_s9 = sshll.u32 %s316_s3, 2  ;;  %646 = vmatmul.mubr.msk.f32.vlgmr.msra.gmra.mxu0 %vm332_vm2, %v322_v3  ;;  %651 = vmatmul.mubr.msk.f32.vlgmr.msra.gmra.mxu1 %vm332_vm2, %v323_v5  ;;  %v325_v8 = vld [vmem:[%s1098_s5] sm:$0xf]  ;;  %s517_s12 = sshll.u32 %s314_s10, 4  ;;  %s518_s12 = int_to_ptr.vmem [resolvable:$true] %s517_s12 }
  0x43   : > { %s321_s15 = scalar_lea.vmem %s1093_s0, %s632_s9  ;;  %729 = vset.pattern.permute.xlu1 %v877_v7  ;;  %730 = vset.pattern.permute.xlu0 %v877_v7  ;;  %s515_s13 = scalar_lea.hbm %s1099_s6, %s636_s28 }
  0x44   : > { %v484_v1 = vld [vmem:[%s321_s15] sm:$0xf]  ;;  %329 = vperm.xlu1 %729, %v324_v6   ;;  %s503_s7 = scalar_lea.sflag [#allocation4], %s1023_s20  ;;  %s787_s15 = scalar_lea.vmem %s518_s12, 64 }
  0x45   : > { %v486_v4 = vsel %vm485_vm1, %v484_v1, 0.0  ;;  %p788_p1 = scmp.ne.s32.totalorder %s518_s12, %s787_s15  ;;  %s878_s29 = smov [#allocation7]  }
  0x46   : > { %487 = vadd.xlane.f32.xlu0 %v486_v4  ;;  %s791_s24 = sshll.u32 %s878_s29, 4  ;;  %s792_s24 = int_to_ptr.vmem [resolvable:$false] %s791_s24 }
  0x47   : > { %p789_p13 = pnand %p788_p1, %p1000_p0  ;;  %s793_s16 = scalar_lea.vmem %s792_s24, 128 }
  0x48   : > { %408 = vperm.xlu1 %729, %v325_v8   ;;  %p794_p2 = scmp.lt.s32.totalorder %s518_s12, %s792_s24  ;;  %p795_p12 = scmp.lt.s32.totalorder %s793_s16, %s787_s15 }
  0x49   : > { %p790_p11 = pneg %p789_p13 }
  0x4a   : > { %p796_p3 = por %p795_p12, %p794_p2 }
  0x4c   : > { %p797_p5 = pnand %p796_p3, %p790_p11 }
  0xbf   : > { %v330_v21 = vpop.permute.xlu1 %329 }
  0xc3   : > { %v409_v23 = vpop.permute.xlu1 %408 }
  0xcf   : > { %v488_v9 = vpop.xlane.xlu0 %487 }
  0xd0   : > { %v489_v10 = vmul.f32 0.0625, %v488_v9 }
  0xd2   : > { %v490_v11 = vsub.f32 %v484_v1, %v489_v10 }
  0xd4   : > { %v491_v12 = vmul.f32 %v490_v11, %v490_v11 }
  0xd6   : > { %v492_v13 = vsel %vm485_vm1, %v491_v12, 0.0 }
  0xd7   : > { %493 = vadd.xlane.f32.xlu0 %v492_v13 }
 0x102   : > { %v402_v14 = vpop.f32.mrf.mxu0  ;;  %v480_v15 = vpop.f32.mrf.mxu1 }
 0x103   : > { %v403_v24 = vadd.f32 %v402_v14, %v330_v21  ;;  %v481_v27 = vadd.f32 %v480_v15, %v409_v23 }
 0x104   : > { %v647_v16 = vpop.f32.mrf.mxu0  ;;  %v652_v17 = vpop.f32.mrf.mxu1 }
 0x160   : > { %v494_v18 = vpop.xlane.xlu0 %493 }
 0x161   : > { %v495_v19 = vmul.f32 0.0625, %v494_v18 }
 0x163   : > { %v496_v20 = vadd.f32 1e-05, %v495_v19 }
 0x165   : > { %731 = vrsqrt.f32 %v496_v20 }
 0x172   : > { %v732_v22 = vpop.eup %731 }
 0x173   : > { %v498_v25 = vmul.f32 %v732_v22, %v490_v11 }
 0x175   : > { %v499_v26 = vmul.f32 %v498_v25, %v403_v24 }
 0x177   : > { %v500_v28 = vadd.f32 %v499_v26, %v481_v27 }
 0x179   : > { %501 = vst.msk [vmem:[%s314_s10] sm:$0xf] %vm485_vm1, %v500_v28 }
 0x17a   : > { %800 = shalt.err (!%p797_p5)
}
 0x17b   : > { %s801_s17 = scalar_lea.hbm %s515_s13, 64  ;;  %s805_s30 = scalar_lea.hbm %s1099_s6, 128 }
 0x17c   : > { %p802_p7 = scmp.ne.s32.totalorder %s515_s13, %s801_s17  ;;  %p806_p10 = scmp.lt.s32.totalorder %s515_s13, %s1099_s6 }
 0x17d   : > { %p807_p9 = scmp.lt.s32.totalorder %s805_s30, %s801_s17 }
 0x17e   : > { %p803_p6 = pnand %p802_p7, %p1000_p0 }
 0x17f   : > { %p808_p8 = por %p807_p9, %p806_p10 }
 0x180   : > { %p804_p4 = pneg %p803_p6 }
 0x182   : > { %p809_p1 = pnand %p808_p8, %p804_p4 }
 0x184   : > { %812 = shalt.err (!%p809_p1)
}
 0x185   : > { %659 = dma.vmem_to_hbm [thread:$0]  (%p1000_p0), %s518_s12, 64, %s515_s13, %s503_s7  }
 0x186 PF: > { %s529_s28 = sand.u32 1, %s851_s21   ;;  %p1114_p13 = scmp.ne.s32.totalorder %s1106_s8, 0 }
 0x187   : > { %p1115_p11 = scmp.ge.s32.totalorder %s871_s26, 2  ;;  %s530_s10 = scalar_lea.sflag [#allocation4], %s529_s28 }
 0x189   : > { %p670_p2 = pnand %p1115_p11, %p1114_p13 }
 0x18b   : > { %p671_p12 = pneg %p670_p2 }
 0x18d   : > { %846 = dma.done.wait (%p671_p12), %s530_s10, 64  }
 0x18e   : > { %848 = vsyncadd (%p671_p12), %s530_s10, 4294967232  ;;  %s23_s26 = sadd.s32 1, %s871_s26   ;;  %s1116_s19 = sld [smem:[#allocation11_spill]] }
 0x18f   : > { %p20_p3 = scmp.ge.s32.totalorder %s23_s26, 4   ;;  %s1117_s21 = smov %s855_s22 }
 0x190   : > { %s1118_s22 = smov %s859_s23  ;;  %s1119_s23 = smov %s1006_s27 }
 0x191   : > { %s1120_s24 = smov %s867_s25  ;;  %22 = sbr.rel (!%p20_p3) target bundleno = 9 (0x9), region = 96 }
 0x194   : > { %s1121_s25 = smov %s1116_s19 }
 0x196   :  { %535 = vsyncpa [#allocation3], 1 }
 0x197   :  { %537 = vsyncpa [#allocation3 + $0x1], 1 }
 0x198   :  { %538 = vsyncpa [#allocation6], 1 }
 0x199   :  { %539 = vsyncpa [#allocation4], 1 }
 0x19a   :  { %541 = vsyncpa [#allocation4 + $0x1], 1 }

</bundles_post_ra>
